<compile_context>
chip_gen: v5e
topology: v5e:2x2
jax: 0.10.0
libtpu: 0.0.40
codegen_flags: <defaults>
</compile_context>

<pallas_src>
import jax
import jax.numpy as jnp
from jax.experimental import pallas as pl
from jax.experimental.pallas import tpu as pltpu


def _mlp_kernel(x_ref, w1_ref, b1_ref, w2_ref, b2_ref, w3t_ref, b3_ref, o_ref):
    x = x_ref[...]                                      # (3, TN)  f32
    w1 = w1_ref[...]                                    # (64, 3)  f32

    # ---- fc1 on the VPU: K=3 contraction as 3 broadcast FMAs + bias, ReLU ----
    h1 = (w1[:, 0:1] * x[0:1, :]
          + w1[:, 1:2] * x[1:2, :]
          + w1[:, 2:3] * x[2:3, :]
          + b1_ref[...])                                # (64, TN) f32
    h1 = jnp.maximum(h1, 0.0)

    # ---- fc2 on the MXU: single-pass bf16 operands, f32 accumulation ----
    h2 = jnp.dot(w2_ref[...], h1.astype(jnp.bfloat16),
                 preferred_element_type=jnp.float32) + b2_ref[...]
    h2 = jnp.maximum(h2, 0.0)                           # (64, TN) f32

    # ---- fc3 on the VPU/XLU: 2 rows as broadcast-mul + sublane reduction ----
    # (avoids a per-tile MXU stationary-weight swap and a 2-row result drain)
    w3t = w3t_ref[...]                                  # (64, 2)  f32
    b3 = b3_ref[...]                                    # (2, 1)   f32
    y0 = jnp.sum(w3t[:, 0:1] * h2, axis=0, keepdims=True) + b3[0:1, :]
    y1 = jnp.sum(w3t[:, 1:2] * h2, axis=0, keepdims=True) + b3[1:2, :]
    o_ref[0:1, :] = y0.astype(o_ref.dtype)              # lane-dense (TN-wide) stores
    o_ref[1:2, :] = y1.astype(o_ref.dtype)


def point_cloud_model(x, params, *, tile_n=None):
    """x: (N, 3) f32 points.  params: torch-convention weights/biases:
       w1 (64,3) b1 (64,1), w2 (64,64) b2 (64,1), w3 (2,64) b3 (2,1).
       Returns (N, 2)."""
    N, F = x.shape
    assert F == 3

    if tile_n is None:
        # Aim for ~8 grid steps (balances v7x's 2 TensorCores at small N),
        # floor 512 (amortize per-step overhead), cap 4096 (VMEM headroom).
        tile_n = int(max(512, min(4096, pl.next_power_of_2(pl.cdiv(N, 8)))))

    w1, b1 = params["w1"], params["b1"]
    w2, b2 = params["w2"], params["b2"]
    w3, b3 = params["w3"], params["b3"]

    # One-time, wrapper-side param prep (never redone per grid step):
    w2_bf = w2.astype(jnp.bfloat16)   # single-pass MXU operand
    w3t = w3.T                        # (64, 2): kernel slices (64,1) columns, no in-kernel transpose

    xt = x.T                          # (3, N) points-on-lanes layout
    grid = (pl.cdiv(N, tile_n),)      # no explicit padding: Pallas masks the ragged tail block

    # Weights/biases are tiny and constant: block index (0,0) every step keeps
    # them VMEM-resident with a single DMA.
    full = lambda a: pl.BlockSpec(a.shape, lambda i: (0, 0))

    out_t = pl.pallas_call(
        _mlp_kernel,
        out_shape=jax.ShapeDtypeStruct((2, N), x.dtype),
        grid_spec=pltpu.PrefetchScalarGridSpec(
            num_scalar_prefetch=0,
            grid=grid,
            in_specs=[
                pl.BlockSpec((3, tile_n), lambda i: (0, i)),   # x tile (lane-dense)
                full(w1), full(b1),
                full(w2_bf), full(b2),
                full(w3t), full(b3),
            ],
            out_specs=pl.BlockSpec((2, tile_n), lambda i: (0, i)),
        ),
        compiler_params=pltpu.CompilerParams(
            dimension_semantics=("parallel",),   # shards the point axis across v7x's 2 TCs
        ),
    )(xt, w1, b1, w2_bf, b2, w3t, b3)            # (2, N)

    return out_t.T                               # (N, 2)


def init_params(key):
    """Deterministic synthetic init, torch nn.Linear convention:
    weight (out, in), bias stored as (out, 1), uniform in +/- 1/sqrt(fan_in)."""
    def linear(key, fan_in, fan_out):
        kw, kb = jax.random.split(key)
        bound = 1.0 / jnp.sqrt(fan_in)
        w = jax.random.uniform(kw, (fan_out, fan_in), jnp.float32, -bound, bound)
        b = jax.random.uniform(kb, (fan_out, 1), jnp.float32, -bound, bound)
        return w, b

    k1, k2, k3 = jax.random.split(key, 3)
    w1, b1 = linear(k1, 3, 64)
    w2, b2 = linear(k2, 64, 64)
    w3, b3 = linear(k3, 64, 2)
    return {"w1": w1, "b1": b1, "w2": w2, "b2": b2, "w3": w3, "b3": b3}


def _reference(x, p):
    # Full-f32 reference (matches the PyTorch module).
    h = jnp.maximum(x @ p["w1"].T + p["b1"].T, 0.0)
    h = jnp.maximum(h @ p["w2"].T + p["b2"].T, 0.0)
    return h @ p["w3"].T + p["b3"].T


if __name__ == "__main__":
    key = jax.random.PRNGKey(0)
    kp, kx = jax.random.split(key)
    params = init_params(kp)

    # Non-multiple-of-tile point count to exercise the ragged last block.
    N = 3000
    x = jax.random.normal(kx, (N, 3), dtype=jnp.float32)

    out = point_cloud_model(x, params)        # auto tile_n -> 512 (6 grid steps)
    out = jax.block_until_ready(out)

    ref = _reference(x, params)
    assert out.shape == (N, 2)
    # fc2 runs with bf16 operands (f32 accumulation) on the MXU, so compare to
    # the f32 reference with a bf16-appropriate tolerance.
    assert jnp.allclose(out, ref, atol=2e-2, rtol=2e-2), "mismatch vs reference"

    print("KERNEL_OK")
</pallas_src>

<mosaic_0001>
module attributes {stable_mosaic.version = 11 : i64} {
  func.func @_mlp_kernel(%arg0: i32, %arg1: memref<3x512xf32, #tpu.memory_space<vmem>>, %arg2: memref<64x3xf32, #tpu.memory_space<vmem>>, %arg3: memref<64x1xf32, #tpu.memory_space<vmem>>, %arg4: memref<64x64xbf16, #tpu.memory_space<vmem>>, %arg5: memref<64x1xf32, #tpu.memory_space<vmem>>, %arg6: memref<64x2xf32, #tpu.memory_space<vmem>>, %arg7: memref<2x1xf32, #tpu.memory_space<vmem>>, %arg8: memref<2x512xf32, #tpu.memory_space<vmem>>) attributes {dimension_semantics = [#tpu.dimension_semantics<parallel>], iteration_bounds = array<i64: 6>, scalar_prefetch = 0 : i64, scratch_operands = 0 : i64, tpu.core_type = #tpu.core_type<tc>, window_params = [{transform_indices = @transform_0, window_bounds = array<i64: 3, 512>}, {pipeline_mode = #tpu.pipeline_mode<synchronous>, transform_indices = @transform_1, window_bounds = array<i64: 64, 3>}, {pipeline_mode = #tpu.pipeline_mode<synchronous>, transform_indices = @transform_2, window_bounds = array<i64: 64, 1>}, {pipeline_mode = #tpu.pipeline_mode<synchronous>, transform_indices = @transform_3, window_bounds = array<i64: 64, 64>}, {pipeline_mode = #tpu.pipeline_mode<synchronous>, transform_indices = @transform_4, window_bounds = array<i64: 64, 1>}, {pipeline_mode = #tpu.pipeline_mode<synchronous>, transform_indices = @transform_5, window_bounds = array<i64: 64, 2>}, {pipeline_mode = #tpu.pipeline_mode<synchronous>, transform_indices = @transform_6, window_bounds = array<i64: 2, 1>}, {transform_indices = @transform_7, window_bounds = array<i64: 2, 512>}]} {
    %c0 = arith.constant 0 : index
    %c0_0 = arith.constant 0 : index
    %0 = vector.load %arg1[%c0, %c0_0] : memref<3x512xf32, #tpu.memory_space<vmem>>, vector<3x512xf32>
    %c0_1 = arith.constant 0 : index
    %c0_2 = arith.constant 0 : index
    %1 = vector.load %arg2[%c0_1, %c0_2] : memref<64x3xf32, #tpu.memory_space<vmem>>, vector<64x3xf32>
    %2 = vector.extract_strided_slice %1 {offsets = [0, 0], sizes = [64, 1], strides = [1, 1]} : vector<64x3xf32> to vector<64x1xf32>
    %3 = vector.extract_strided_slice %0 {offsets = [0, 0], sizes = [1, 512], strides = [1, 1]} : vector<3x512xf32> to vector<1x512xf32>
    %4 = vector.broadcast %2 : vector<64x1xf32> to vector<64x512xf32>
    %5 = vector.broadcast %3 : vector<1x512xf32> to vector<64x512xf32>
    %6 = arith.mulf %4, %5 : vector<64x512xf32>
    %7 = vector.extract_strided_slice %1 {offsets = [0, 1], sizes = [64, 1], strides = [1, 1]} : vector<64x3xf32> to vector<64x1xf32>
    %8 = vector.extract_strided_slice %0 {offsets = [1, 0], sizes = [1, 512], strides = [1, 1]} : vector<3x512xf32> to vector<1x512xf32>
    %9 = vector.broadcast %7 : vector<64x1xf32> to vector<64x512xf32>
    %10 = vector.broadcast %8 : vector<1x512xf32> to vector<64x512xf32>
    %11 = arith.mulf %9, %10 : vector<64x512xf32>
    %12 = arith.addf %6, %11 : vector<64x512xf32>
    %13 = vector.extract_strided_slice %1 {offsets = [0, 2], sizes = [64, 1], strides = [1, 1]} : vector<64x3xf32> to vector<64x1xf32>
    %14 = vector.extract_strided_slice %0 {offsets = [2, 0], sizes = [1, 512], strides = [1, 1]} : vector<3x512xf32> to vector<1x512xf32>
    %15 = vector.broadcast %13 : vector<64x1xf32> to vector<64x512xf32>
    %16 = vector.broadcast %14 : vector<1x512xf32> to vector<64x512xf32>
    %17 = arith.mulf %15, %16 : vector<64x512xf32>
    %18 = arith.addf %12, %17 : vector<64x512xf32>
    %c0_3 = arith.constant 0 : index
    %c0_4 = arith.constant 0 : index
    %19 = vector.load %arg3[%c0_3, %c0_4] : memref<64x1xf32, #tpu.memory_space<vmem>>, vector<64x1xf32>
    %20 = vector.broadcast %19 : vector<64x1xf32> to vector<64x512xf32>
    %21 = arith.addf %18, %20 : vector<64x512xf32>
    %cst = arith.constant 0.000000e+00 : f32
    %22 = vector.broadcast %cst : f32 to vector<64x512xf32>
    %23 = arith.maximumf %21, %22 : vector<64x512xf32>
    %c0_5 = arith.constant 0 : index
    %c0_6 = arith.constant 0 : index
    %24 = vector.load %arg4[%c0_5, %c0_6] : memref<64x64xbf16, #tpu.memory_space<vmem>>, vector<64x64xbf16>
    %25 = arith.truncf %23 : vector<64x512xf32> to vector<64x512xbf16>
    %cst_7 = arith.constant dense<0.000000e+00> : vector<64x512xf32>
    %26 = tpu.matmul %24, %25, %cst_7 {dimension_numbers = #tpu.dot_dimension_numbers<[1], [0], [0], [1], [0, 0, 1, 1], [], []>} : vector<64x64xbf16>, vector<64x512xbf16>, vector<64x512xf32> -> vector<64x512xf32>
    %c0_8 = arith.constant 0 : index
    %c0_9 = arith.constant 0 : index
    %27 = vector.load %arg5[%c0_8, %c0_9] : memref<64x1xf32, #tpu.memory_space<vmem>>, vector<64x1xf32>
    %28 = vector.broadcast %27 : vector<64x1xf32> to vector<64x512xf32>
    %29 = arith.addf %26, %28 : vector<64x512xf32>
    %cst_10 = arith.constant 0.000000e+00 : f32
    %30 = vector.broadcast %cst_10 : f32 to vector<64x512xf32>
    %31 = arith.maximumf %29, %30 : vector<64x512xf32>
    %c0_11 = arith.constant 0 : index
    %c0_12 = arith.constant 0 : index
    %32 = vector.load %arg6[%c0_11, %c0_12] : memref<64x2xf32, #tpu.memory_space<vmem>>, vector<64x2xf32>
    %c0_13 = arith.constant 0 : index
    %c0_14 = arith.constant 0 : index
    %33 = vector.load %arg7[%c0_13, %c0_14] : memref<2x1xf32, #tpu.memory_space<vmem>>, vector<2x1xf32>
    %34 = vector.extract_strided_slice %32 {offsets = [0, 0], sizes = [64, 1], strides = [1, 1]} : vector<64x2xf32> to vector<64x1xf32>
    %35 = vector.broadcast %34 : vector<64x1xf32> to vector<64x512xf32>
    %36 = arith.mulf %35, %31 : vector<64x512xf32>
    %cst_15 = arith.constant dense<0.000000e+00> : vector<512xf32>
    %37 = vector.multi_reduction <add>, %36, %cst_15 [0] : vector<64x512xf32> to vector<512xf32>
    %38 = vector.shape_cast %37 : vector<512xf32> to vector<1x512xf32>
    %39 = vector.extract_strided_slice %33 {offsets = [0, 0], sizes = [1, 1], strides = [1, 1]} : vector<2x1xf32> to vector<1x1xf32>
    %40 = vector.broadcast %39 : vector<1x1xf32> to vector<1x512xf32>
    %41 = arith.addf %38, %40 : vector<1x512xf32>
    %42 = vector.extract_strided_slice %32 {offsets = [0, 1], sizes = [64, 1], strides = [1, 1]} : vector<64x2xf32> to vector<64x1xf32>
    %43 = vector.broadcast %42 : vector<64x1xf32> to vector<64x512xf32>
    %44 = arith.mulf %43, %31 : vector<64x512xf32>
    %cst_16 = arith.constant dense<0.000000e+00> : vector<512xf32>
    %45 = vector.multi_reduction <add>, %44, %cst_16 [0] : vector<64x512xf32> to vector<512xf32>
    %46 = vector.shape_cast %45 : vector<512xf32> to vector<1x512xf32>
    %47 = vector.extract_strided_slice %33 {offsets = [1, 0], sizes = [1, 1], strides = [1, 1]} : vector<2x1xf32> to vector<1x1xf32>
    %48 = vector.broadcast %47 : vector<1x1xf32> to vector<1x512xf32>
    %49 = arith.addf %46, %48 : vector<1x512xf32>
    %c0_17 = arith.constant 0 : index
    %c0_18 = arith.constant 0 : index
    %50 = vector.load %arg8[%c0_17, %c0_18] : memref<2x512xf32, #tpu.memory_space<vmem>>, vector<1x512xf32>
    tpu.vector_store %arg8[%c0_17, %c0_18], %41 {strides = array<i32>} : memref<2x512xf32, #tpu.memory_space<vmem>>, vector<1x512xf32>,
    %c1 = arith.constant 1 : index
    %c0_19 = arith.constant 0 : index
    %51 = vector.load %arg8[%c1, %c0_19] : memref<2x512xf32, #tpu.memory_space<vmem>>, vector<1x512xf32>
    tpu.vector_store %arg8[%c1, %c0_19], %49 {strides = array<i32>} : memref<2x512xf32, #tpu.memory_space<vmem>>, vector<1x512xf32>,
    return
  }
  func.func @transform_0(%arg0: i32) -> (i32, i32) {
    %c0_i32 = arith.constant 0 : i32
    %c0_i32_0 = arith.constant 0 : i32
    return %c0_i32, %arg0 : i32, i32
  }
  func.func @transform_1(%arg0: i32) -> (i32, i32) {
    %c0_i32 = arith.constant 0 : i32
    %c0_i32_0 = arith.constant 0 : i32
    %c0_i32_1 = arith.constant 0 : i32
    return %c0_i32, %c0_i32_0 : i32, i32
  }
  func.func @transform_2(%arg0: i32) -> (i32, i32) {
    %c0_i32 = arith.constant 0 : i32
    %c0_i32_0 = arith.constant 0 : i32
    %c0_i32_1 = arith.constant 0 : i32
    return %c0_i32, %c0_i32_0 : i32, i32
  }
  func.func @transform_3(%arg0: i32) -> (i32, i32) {
    %c0_i32 = arith.constant 0 : i32
    %c0_i32_0 = arith.constant 0 : i32
    %c0_i32_1 = arith.constant 0 : i32
    return %c0_i32, %c0_i32_0 : i32, i32
  }
  func.func @transform_4(%arg0: i32) -> (i32, i32) {
    %c0_i32 = arith.constant 0 : i32
    %c0_i32_0 = arith.constant 0 : i32
    %c0_i32_1 = arith.constant 0 : i32
    return %c0_i32, %c0_i32_0 : i32, i32
  }
  func.func @transform_5(%arg0: i32) -> (i32, i32) {
    %c0_i32 = arith.constant 0 : i32
    %c0_i32_0 = arith.constant 0 : i32
    %c0_i32_1 = arith.constant 0 : i32
    return %c0_i32, %c0_i32_0 : i32, i32
  }
  func.func @transform_6(%arg0: i32) -> (i32, i32) {
    %c0_i32 = arith.constant 0 : i32
    %c0_i32_0 = arith.constant 0 : i32
    %c0_i32_1 = arith.constant 0 : i32
    return %c0_i32, %c0_i32_0 : i32, i32
  }
  func.func @transform_7(%arg0: i32) -> (i32, i32) {
    %c0_i32 = arith.constant 0 : i32
    %c0_i32_0 = arith.constant 0 : i32
    return %c0_i32, %arg0 : i32, i32
  }
}

</mosaic_0001>

<bundles_post_ra>
// kernel: tpu_custom_call.1
= control target key start
LH: loop header
LB: loop body
LE: loop exit
PB: predicated region body
PF: predicated region fallthrough
CT: control target
= control target key end

     0   :  { %12 = vsyncpa [#allocation3], 0  ;;  %s2083_s0 = inlined_call_operand.vmem [shape: f32[3,3000], index: 0, kind: input, shape index: {}]   ;;  %s2084_s1 = inlined_call_operand.vmem [shape: f32[64,3], index: 1, kind: input, shape index: {}]   ;;  %s2085_s2 = inlined_call_operand.vmem [shape: f32[64,1], index: 2, kind: input, shape index: {}]   ;;  %s2086_s3 = inlined_call_operand.vmem [shape: bf16[64,64], index: 3, kind: input, shape index: {}]   ;;  %s2087_s4 = inlined_call_operand.vmem [shape: f32[64,1], index: 4, kind: input, shape index: {}]   ;;  %s2088_s5 = inlined_call_operand.vmem [shape: f32[64,2], index: 5, kind: input, shape index: {}]   ;;  %s2089_s6 = inlined_call_operand.vmem [shape: f32[2,1], index: 6, kind: input, shape index: {}]   ;;  %s2090_s7 = inlined_call_operand.hbm [shape: f32[2,3000], index: 7, kind: output, shape index: {}]  }
   0x1   :  { %14 = vsyncpa [#allocation3 + $0x1], 0  ;;  %s1554_s24 = smov 0   ;;  %s1556_s25 = smov 0  }
   0x2   :  { %s1558_s26 = smov 0   ;;  %s1560_s27 = smov 0  }
   0x3 LB: > { %s1575_s28 = sadd.s32 4294967295, %s1509_s27   ;;  %s1328_s29 = sadd.s32 4294967294, %s1509_s27   ;;  %s1509_s27 = sphi %s1560_s27, %s2112_s27   ;;  %s1505_s26 = sphi %s1558_s26, %s2111_s26   ;;  %s1501_s25 = sphi %s1556_s25, %s2110_s25   ;;  %s1497_s24 = sphi %s1554_s24, %s2109_s24  }
   0x4   : > { %s1579_s30 = sadd.s32 1, %s1509_s27   ;;  %s179_s8 = sadd.s32 1, %s1505_s26 }
   0x5   : > { %s176_s9 = ssub.s32 %s1509_s27, %s1579_s30  ;;  %p189_p0 = scmp.ne.s32.totalorder %s1505_s26, %s1501_s25 }
   0x6   : > { %p177_p1 = scmp.eq.s32.totalorder %s176_s9, 0  ;;  %p190_p2 = scmp.eq.s32.totalorder %s1575_s28, 5 }
   0x7   : > { %p195_p3 = scmp.ne.s32.totalorder %s1501_s25, %s1497_s24  ;;  %p196_p4 = scmp.eq.s32.totalorder %s1328_s29, 5 }
   0x8   : > { %s1590_s10 = scalar_select %p177_p1, %s1505_s26, %s179_s8  }
   0x9   : > { %p1592_p5 = por %p190_p2, %p189_p0  ;;  %p1596_p6 = por %p196_p4, %p195_p3 }
   0xa   : > { %p1331_p7 = scmp.ge.s32.totalorder %s1509_s27, 1  ;;  %p241_p8 = scmp.lt.s32.totalorder %s1509_s27, 7 }
   0xc   : > { %p242_p9 = pnand %p1331_p7, %p241_p8 }
   0xe   : > { %245 = sbr.rel (%p242_p9) target bundleno = 465 (0x1d1), region = 48 }
  0x13   : > { %v287_v0 = vld [vmem:[%s2084_s1 + $0x20] sm:$0xff]  ;;  %v285_v1 = vld [vmem:[%s2084_s1 + $0x10] sm:$0xff]  ;;  %v2091_v3 = vmov 0   ;;  %v288_v4 = vld [vmem:[%s2084_s1 + $0x28] sm:$0xff]  ;;  %v2093_v9 = vmov 1   ;;  %v1513_v10 = vmov 2  }
  0x14   : > { %v283_v2 = vld [vmem:[%s2084_s1] sm:$0xff]  ;;  %1422 = vset.pattern.permute.xlu2 %v2091_v3  ;;  %1421 = vset.pattern.permute.xlu1 %v2091_v3  ;;  %v286_v5 = vld [vmem:[%s2084_s1 + $0x18] sm:$0xff]  ;;  %v284_v6 = vld [vmem:[%s2084_s1 + $0x8] sm:$0xff]  ;;  %s1333_s17 = sshll.u32 %s1575_s28, 2  ;;  %vm797_vm0 = vcmask 523264   ;;  %s1377_s29 = sshll.u32 %s1575_s28, 3 }
  0x15   : > { %1420 = vset.pattern.permute.xlu0 %v2091_v3  ;;  %313 = vperm.xlu2 %1422, %v287_v0   ;;  %v290_v7 = vld [vmem:[%s2084_s1 + $0x38] sm:$0xff]  ;;  %v289_v8 = vld [vmem:[%s2084_s1 + $0x30] sm:$0xff]  ;;  %v598_v13 = vld [vmem:[%s2085_s2 + $0x28] sm:$0xff]  ;;  %p274_p10 = scmp.lt.s32.totalorder %s1333_s17, 23  ;;  %vm1227_vm1 = vcmask 1040384   ;;  %vm1229_vm2 = vcmask 1042434   ;;  %s1264_s13 = scalar_lea.hbm %s2090_s7, %s1377_s29 }
  0x16   : > { %303 = vperm.xlu1 %1421, %v285_v1   ;;  %293 = vperm.xlu0 %1420, %v283_v2   ;;  %v600_v11 = vld [vmem:[%s2085_s2 + $0x38] sm:$0xff]  ;;  %v599_v12 = vld [vmem:[%s2085_s2 + $0x30] sm:$0xff]  ;;  %v593_v14 = vld [vmem:[%s2085_s2] sm:$0xff]  ;;  %vm1231_vm3 = vcmask 1041408   ;;  %s1467_s21 = scalar_lea.hbm %s2090_s7, 48 }
  0x17   : > { %v597_v15 = vld [vmem:[%s2085_s2 + $0x20] sm:$0xff]  ;;  %v595_v16 = vld [vmem:[%s2085_s2 + $0x10] sm:$0xff]  ;;  %v596_v17 = vld [vmem:[%s2085_s2 + $0x18] sm:$0xff]  ;;  %s2114_s17 = smov (!%p274_p10, %s1333_s17), 23 }
  0x18   : > { %v959_v18 = vld [vmem:[%s2088_s5 + $0x8] sm:$0xff]  ;;  %v729_v21 = vld [vmem:[%s2087_s4] sm:$0xff]  ;;  %s1334_s22 = sshll.u32 %s2114_s17, 2  ;;  %v731_v23 = vld [vmem:[%s2087_s4 + $0x10] sm:$0xff] }
  0x19   : > { %v594_v20 = vld [vmem:[%s2085_s2 + $0x8] sm:$0xff]  ;;  %v732_v24 = vld [vmem:[%s2087_s4 + $0x18] sm:$0xff]  ;;  %s277_s15 = scalar_lea.vmem %s2083_s0, %s1334_s22  ;;  %v735_v37 = vld [vmem:[%s2087_s4 + $0x30] sm:$0xff]  ;;  %s270_s22 = sand.u32 1, %s1501_s25  }
  0x1a   : > { %v1687_v25 = vld [vmem:[%s277_s15] sm:$0x77]  ;;  %v1689_v26 = vld [vmem:[%s277_s15 + $0x8] sm:$0x77]  ;;  %s1332_s23 = sshll.u32 %s270_s22, 3  ;;  %s1268_s15 = sshll.u32 %s1264_s13, 4  ;;  %s1269_s15 = int_to_ptr.hbm [resolvable:$true] %s1268_s15 }
  0x1b   : > { %v409_v28 = vperm.slane %v1687_v25, 1  ;;  %v410_v29 = vperm.slane %v1687_v25, 5  ;;  %v411_v30 = vperm.slane %v1689_v26, 1  ;;  %v412_v31 = vperm.slane %v1689_v26, 5  ;;  %v734_v36 = vld [vmem:[%s2087_s4 + $0x28] sm:$0xff]  ;;  %v958_v57 = vld [vmem:[%s2088_s5] sm:$0xff] }
  0x1c   : > { %v333_v32 = vperm.slane %v1687_v25, 0  ;;  %v334_v33 = vperm.slane %v1687_v25, 4  ;;  %v335_v34 = vperm.slane %v1689_v26, 0  ;;  %v336_v35 = vperm.slane %v1689_v26, 4  ;;  %s272_s14 = scalar_lea.vmem [#allocation2], %s1332_s23  ;;  %s1253_s16 = scalar_lea.sflag [#allocation3], %s270_s22 }
  0x1d   : > { %318 = vperm.xlu2 %1422, %v288_v4   ;;  %v1705_v38 = vperm.slane %v409_v28, 1  ;;  %v1707_v39 = vperm.slane %v410_v29, 1  ;;  %v1709_v40 = vperm.slane %v411_v30, 1  ;;  %v1711_v41 = vperm.slane %v412_v31, 1  ;;  %s1266_s28 = sshll.u32 %s272_s14, 4  ;;  %s1461_s17 = sshra.s32 %s1269_s15, 4  ;;  %s1267_s28 = int_to_ptr.vmem [resolvable:$true] %s1266_s28  ;;  %s1462_s17 = int_to_ptr.hbm [resolvable:$true] %s1461_s17 }
  0x1e   : > { %308 = vperm.xlu1 %1421, %v286_v5   ;;  %298 = vperm.xlu0 %1420, %v284_v6   ;;  %v1713_v42 = vperm.slane %v333_v32, 0  ;;  %v1715_v43 = vperm.slane %v334_v33, 0  ;;  %v1717_v44 = vperm.slane %v335_v34, 0  ;;  %v1719_v45 = vperm.slane %v336_v35, 0  ;;  %s1463_s18 = scalar_lea.hbm %s1462_s17, 8  ;;  %p1468_p0 = scmp.lt.s32.totalorder %s1462_s17, %s2090_s7 }
  0x1f   : > { %p1464_p11 = scmp.ne.s32.totalorder %s1462_s17, %s1463_s18  ;;  %p1469_p1 = scmp.lt.s32.totalorder %s1467_s21, %s1463_s18 }
  0x21   : > { %p1465_p12 = pnand %p1464_p11, %p1592_p5  ;;  %p1470_p2 = por %p1469_p1, %p1468_p0 }
  0x23   : > { %p1466_p13 = pneg %p1465_p12 }
  0x25   : > { %1423 = vset.pattern.permute.xlu2 %v2093_v9  ;;  %p1471_p3 = pnand %p1470_p2, %p1466_p13 }
  0x26   : > { %328 = vperm.xlu1 %1421, %v290_v7   ;;  %323 = vperm.xlu0 %1420, %v289_v8  }
  0x27   : > { %378 = vperm.xlu2 %1423, %v283_v2  }
  0x2e   : > { %1425 = vset.pattern.permute.xlu1 %v2093_v9  ;;  %1424 = vset.pattern.permute.xlu0 %v2093_v9 }
  0x2f   : > { %402 = vperm.xlu1 %1425, %v289_v8   ;;  %406 = vperm.xlu2 %1423, %v290_v7  }
  0x30   : > { %382 = vperm.xlu0 %1424, %v284_v6  }
  0x37   : > { %1426 = vset.pattern.permute.xlu1 %v1513_v10  ;;  %1427 = vset.pattern.permute.xlu2 %v1513_v10 }
  0x38   : > { %394 = vperm.xlu0 %1424, %v287_v0   ;;  %510 = vperm.xlu1 %1426, %v289_v8   ;;  %v517_v8 = vperm.slane %v1687_v25, 2 }
  0x39   : > { %514 = vperm.xlu2 %1427, %v290_v7  }
  0x40   : > { %1429 = vset.pattern.permute.xlu0 %v1513_v10  ;;  %1428 = vset.pattern.permute.xlu1 %v2093_v9 }
  0x41   : > { %502 = vperm.xlu2 %1427, %v287_v0   ;;  %506 = vperm.xlu0 %1429, %v288_v4   ;;  %v961_v0 = vld [vmem:[%s2088_s5 + $0x18] sm:$0xff] }
  0x42   : > { %398 = vperm.xlu1 %1428, %v288_v4  }
  0x49   : > { %1431 = vset.pattern.permute.xlu2 %v2091_v3  ;;  %494 = vperm.xlu0 %1429, %v285_v1  }
  0x4a   : > { %1430 = vset.pattern.permute.xlu1 %v2091_v3  ;;  %638 = vperm.xlu2 %1431, %v600_v11   ;;  %v519_v11 = vperm.slane %v1689_v26, 2 }
  0x4b   : > { %633 = vperm.xlu1 %1430, %v599_v12   ;;  %v520_v12 = vperm.slane %v1689_v26, 6 }
  0x51   : > { %1436 = vset.pattern.permute.xlu0 %v2091_v3 }
  0x52   : > { %1433 = vset.pattern.permute.xlu2 %v2093_v9  ;;  %628 = vperm.xlu0 %1436, %v598_v13  }
  0x53   : > { %1432 = vset.pattern.permute.xlu1 %v2093_v9  ;;  %390 = vperm.xlu2 %1433, %v286_v5  }
  0x54   : > { %386 = vperm.xlu1 %1432, %v285_v1  }
  0x5a   : > { %603 = vperm.xlu0 %1436, %v593_v14  }
  0x5b   : > { %1435 = vset.pattern.permute.xlu2 %v2091_v3 }
  0x5c   : > { %1434 = vset.pattern.permute.xlu1 %v1513_v10  ;;  %623 = vperm.xlu2 %1435, %v597_v15  }
  0x5d   : > { %498 = vperm.xlu1 %1434, %v286_v5  }
  0x62   : > { %1441 = vset.pattern.permute.xlu0 %v2093_v9 }
  0x63   : > { %1105 = vperm.xlu0 %1441, %v959_v18  }
  0x64   : > { %1437 = vset.pattern.permute.xlu2 %v1513_v10  ;;  %v518_v10 = vperm.slane %v1687_v25, 6 }
  0x65   : > { %486 = vperm.xlu1 %1434, %v283_v2   ;;  %490 = vperm.xlu2 %1437, %v284_v6  }
  0x6b   : > { %1442 = vset.pattern.permute.xlu0 %v2091_v3 }
  0x6d   : > { %1438 = vset.pattern.permute.xlu1 %v2091_v3  ;;  %1439 = vset.pattern.permute.xlu2 %v2091_v3 }
  0x6e   : > { %613 = vperm.xlu1 %1438, %v595_v16   ;;  %618 = vperm.xlu2 %1439, %v596_v17   ;;  %v1767_v17 = vperm.slane %v517_v8, 2 }
  0x6f   : > { %v1666_v19 = vpop.permute.xlu2 %313 }
  0x70   : > { %v361_v13 = vmul.f32 %v1713_v42, %v1666_v19  ;;  %v362_v14 = vmul.f32 %v1715_v43, %v1666_v19  ;;  %v1763_v15 = vmul.f32 %v1717_v44, %v1666_v19  ;;  %v364_v33 = vmul.f32 %v1719_v45, %v1666_v19 }
  0x76   : > { %608 = vperm.xlu1 %1438, %v594_v20   ;;  %739 = vperm.xlu2 %1439, %v729_v21   ;;  %v1771_v20 = vperm.slane %v519_v11, 2  ;;  %v1773_v21 = vperm.slane %v520_v12, 2 }
  0x77   : > { %v1675_v22 = vpop.permute.xlu2 %318 }
  0x78   : > { %v1787_v34 = vmul.f32 %v1713_v42, %v1675_v22  ;;  %v1791_v35 = vmul.f32 %v1715_v43, %v1675_v22 }
  0x7e   : > { %749 = vperm.xlu1 %1438, %v731_v23   ;;  %754 = vperm.xlu2 %1439, %v732_v24  }
  0x81   : > { %v379_v27 = vpop.permute.xlu2 %378 }
  0x82   : > { %v421_v46 = vmul.f32 %v1705_v38, %v379_v27  ;;  %v422_v47 = vmul.f32 %v1707_v39, %v379_v27  ;;  %v423_v48 = vmul.f32 %v1709_v40, %v379_v27  ;;  %v424_v49 = vmul.f32 %v1711_v41, %v379_v27 }
  0x86   : > { %764 = vperm.xlu1 %1438, %v734_v36   ;;  %769 = vperm.xlu2 %1439, %v735_v37   ;;  %v1795_v36 = vmul.f32 %v1717_v44, %v1675_v22  ;;  %v1799_v37 = vmul.f32 %v1719_v45, %v1675_v22 }
  0x88   : > { %v1725_v50 = vpop.permute.xlu1 %303  ;;  %v294_v51 = vpop.permute.xlu0 %293 }
  0x89   : > { %v345_v52 = vmul.f32 %v1713_v42, %v294_v51  ;;  %v346_v53 = vmul.f32 %v1715_v43, %v294_v51  ;;  %v347_v54 = vmul.f32 %v1717_v44, %v294_v51  ;;  %v348_v55 = vmul.f32 %v1719_v45, %v294_v51  ;;  %v407_v56 = vpop.permute.xlu2 %406 }
  0x8a   : > { %v449_v24 = vmul.f32 %v1705_v38, %v407_v56  ;;  %v450_v25 = vmul.f32 %v1707_v39, %v407_v56  ;;  %v451_v29 = vmul.f32 %v1709_v40, %v407_v56  ;;  %v452_v30 = vmul.f32 %v1711_v41, %v407_v56 }
  0x8b   : > { %v1734_v58 = vadd.f32 %v421_v46, %v345_v52  ;;  %v1736_v59 = vadd.f32 %v422_v47, %v346_v53  ;;  %v1738_v60 = vadd.f32 %v423_v48, %v347_v54  ;;  %v1740_v61 = vadd.f32 %v424_v49, %v348_v55 }
  0x8d   : > { %2097 = vst [vmem:[#allocation5_spill] sm:$0xff] %v1734_v58 }
  0x8e   : > { %2098 = vst [vmem:[#allocation6_spill] sm:$0xff] %v1736_v59  ;;  %969 = vperm.xlu1 %1438, %v958_v57   ;;  %974 = vperm.xlu2 %1439, %v959_v18   ;;  %v1769_v18 = vperm.slane %v518_v10, 2 }
  0x8f   : > { %2099 = vst [vmem:[#allocation7_spill] sm:$0xff] %v1738_v60 }
  0x90   : > { %2100 = vst [vmem:[#allocation8_spill] sm:$0xff] %v1740_v61  ;;  %v1742_v62 = vpop.permute.xlu1 %308  ;;  %v1744_v63 = vpop.permute.xlu0 %298 }
  0x93   : > { %v515_v1 = vpop.permute.xlu2 %514 }
  0x94   : > { %v557_v46 = vmul.f32 %v1767_v17, %v515_v1  ;;  %v558_v19 = vmul.f32 %v1769_v18, %v515_v1  ;;  %v559_v47 = vmul.f32 %v1771_v20, %v515_v1  ;;  %v560_v48 = vmul.f32 %v1773_v21, %v515_v1 }
  0x96   : > { %984 = vperm.xlu1 %1438, %v961_v0   ;;  %1440 = vset.pattern.permute.xlu2 %v2093_v9 }
  0x97   : > { %1101 = vperm.xlu2 %1440, %v958_v57  }
  0x98   : > { %v329_v2 = vpop.permute.xlu1 %328  ;;  %v324_v4 = vpop.permute.xlu0 %323 }
  0x99   : > { %v373_v26 = vmul.f32 %v1713_v42, %v329_v2  ;;  %v374_v27 = vmul.f32 %v1715_v43, %v329_v2  ;;  %v375_v31 = vmul.f32 %v1717_v44, %v329_v2  ;;  %v376_v32 = vmul.f32 %v1719_v45, %v329_v2 }
  0x9a   : > { %v369_v49 = vmul.f32 %v1713_v42, %v324_v4  ;;  %v370_v53 = vmul.f32 %v1715_v43, %v324_v4  ;;  %v371_v54 = vmul.f32 %v1717_v44, %v324_v4  ;;  %v372_v22 = vmul.f32 %v1719_v45, %v324_v4 }
  0x9b   : > { %v503_v5 = vpop.permute.xlu2 %502  ;;  %v481_v51 = vadd.f32 %v449_v24, %v373_v26  ;;  %v482_v52 = vadd.f32 %v450_v25, %v374_v27  ;;  %v483_v55 = vadd.f32 %v451_v29, %v375_v31  ;;  %v484_v56 = vadd.f32 %v452_v30, %v376_v32 }
  0x9c   : > { %v545_v1 = vmul.f32 %v1767_v17, %v503_v5  ;;  %v546_v8 = vmul.f32 %v1769_v18, %v503_v5  ;;  %v547_v10 = vmul.f32 %v1771_v20, %v503_v5  ;;  %v548_v11 = vmul.f32 %v1773_v21, %v503_v5 }
  0x9d   : > { %v589_v26 = vadd.f32 %v557_v46, %v481_v51  ;;  %v590_v27 = vadd.f32 %v558_v19, %v482_v52  ;;  %v591_v32 = vadd.f32 %v559_v47, %v483_v55  ;;  %v592_v3 = vadd.f32 %v560_v48, %v484_v56 }
  0x9e   : > { %1443 = vset.pattern.permute.xlu1 %v2093_v9 }
  0x9f   : > { %1113 = vperm.xlu2 %1440, %v961_v0  }
  0xa1   : > { %v403_v6 = vpop.permute.xlu1 %402 }
  0xa2   : > { %v1751_v7 = vpop.permute.xlu0 %382  ;;  %v445_v57 = vmul.f32 %v1705_v38, %v403_v6  ;;  %v446_v0 = vmul.f32 %v1707_v39, %v403_v6  ;;  %v447_v2 = vmul.f32 %v1709_v40, %v403_v6  ;;  %v448_v29 = vmul.f32 %v1711_v41, %v403_v6 }
  0xa3   : > { %2101 = vst [vmem:[#allocation9_spill] sm:$0xff] %v1751_v7 }
  0xa4   : > { %v1765_v16 = vpop.permute.xlu2 %638  ;;  %v477_v9 = vadd.f32 %v445_v57, %v369_v49  ;;  %v478_v5 = vadd.f32 %v446_v0, %v370_v53  ;;  %v479_v60 = vadd.f32 %v447_v2, %v371_v54  ;;  %v480_v52 = vadd.f32 %v448_v29, %v372_v22 }
  0xa5   : > { %v669_v61 = vadd.f32 %v1765_v16, %v589_v26  ;;  %v670_v46 = vadd.f32 %v1765_v16, %v590_v27  ;;  %v671_v49 = vadd.f32 %v1765_v16, %v591_v32  ;;  %v672_v53 = vadd.f32 %v1765_v16, %v592_v3 }
  0xa7   : > { %v701_v56 = vmax.f32 %v669_v61, 0.0  ;;  %v702_v0 = vmax.f32 %v670_v46, 0.0 }
  0xaa   : > { %v511_v23 = vpop.permute.xlu1 %510  ;;  %v395_v28 = vpop.permute.xlu0 %394 }
  0xab   : > { %v437_v12 = vmul.f32 %v1705_v38, %v395_v28  ;;  %v438_v24 = vmul.f32 %v1707_v39, %v395_v28  ;;  %v439_v30 = vmul.f32 %v1709_v40, %v395_v28  ;;  %v440_v59 = vmul.f32 %v1711_v41, %v395_v28 }
  0xac   : > { %v553_v58 = vmul.f32 %v1767_v17, %v511_v23  ;;  %v554_v7 = vmul.f32 %v1769_v18, %v511_v23  ;;  %v555_v51 = vmul.f32 %v1771_v20, %v511_v23  ;;  %v556_v47 = vmul.f32 %v1773_v21, %v511_v23 }
  0xad   : > { %v1818_v25 = vpop.permute.xlu2 %390  ;;  %v469_v19 = vadd.f32 %v437_v12, %v361_v13  ;;  %v470_v6 = vadd.f32 %v438_v24, %v362_v14  ;;  %v471_v48 = vadd.f32 %v439_v30, %v1763_v15  ;;  %v472_v13 = vadd.f32 %v440_v59, %v364_v33 }
  0xae   : > { %v585_v14 = vadd.f32 %v553_v58, %v477_v9  ;;  %v586_v57 = vadd.f32 %v554_v7, %v478_v5  ;;  %v587_v23 = vadd.f32 %v555_v51, %v479_v60  ;;  %v588_v15 = vadd.f32 %v556_v47, %v480_v52 }
  0xaf   : > { %v577_v12 = vadd.f32 %v545_v1, %v469_v19  ;;  %v578_v24 = vadd.f32 %v546_v8, %v470_v6  ;;  %v579_v26 = vadd.f32 %v547_v10, %v471_v48  ;;  %v703_v30 = vmax.f32 %v671_v49, 0.0 }
  0xb0   : > { %v580_v32 = vadd.f32 %v548_v11, %v472_v13 }
  0xb3   : > { %v507_v4 = vpop.permute.xlu0 %506 }
  0xb4   : > { %v399_v31 = vpop.permute.xlu1 %398  ;;  %v549_v3 = vmul.f32 %v1767_v17, %v507_v4  ;;  %v550_v16 = vmul.f32 %v1769_v18, %v507_v4  ;;  %v551_v58 = vmul.f32 %v1771_v20, %v507_v4  ;;  %v552_v29 = vmul.f32 %v1773_v21, %v507_v4 }
  0xb5   : > { %v441_v28 = vmul.f32 %v1705_v38, %v399_v31  ;;  %v442_v54 = vmul.f32 %v1707_v39, %v399_v31  ;;  %v443_v55 = vmul.f32 %v1709_v40, %v399_v31  ;;  %v444_v22 = vmul.f32 %v1711_v41, %v399_v31 }
  0xb6   : > { %v624_v61 = vpop.permute.xlu2 %623  ;;  %v704_v31 = vmax.f32 %v672_v53, 0.0 }
  0xb7   : > { %v473_v27 = vadd.f32 %v441_v28, %v1787_v34  ;;  %v474_v59 = vadd.f32 %v442_v54, %v1791_v35  ;;  %v475_v9 = vadd.f32 %v443_v55, %v1795_v36  ;;  %v476_v10 = vadd.f32 %v444_v22, %v1799_v37 }
  0xb8   : > { %v657_v34 = vadd.f32 %v624_v61, %v577_v12  ;;  %v658_v5 = vadd.f32 %v624_v61, %v578_v24  ;;  %v659_v35 = vadd.f32 %v624_v61, %v579_v26  ;;  %v660_v52 = vadd.f32 %v624_v61, %v580_v32 }
  0xb9   : > { %v581_v51 = vadd.f32 %v549_v3, %v473_v27  ;;  %v582_v47 = vadd.f32 %v550_v16, %v474_v59  ;;  %v583_v48 = vadd.f32 %v551_v58, %v475_v9  ;;  %v584_v53 = vadd.f32 %v552_v29, %v476_v10 }
  0xba   : > { %v691_v12 = vmax.f32 %v659_v35, 0.0  ;;  %v692_v24 = vmax.f32 %v660_v52, 0.0  ;;  %v353_v58 = vmul.f32 %v1713_v42, %v1725_v50  ;;  %v354_v61 = vmul.f32 %v1715_v43, %v1725_v50 }
  0xbb   : > { %v1835_v2 = vpop.permute.xlu0 %494  ;;  %v434_v29 = vmul.f32 %v1707_v39, %v1818_v25  ;;  %v358_v32 = vmul.f32 %v1715_v43, %v1742_v62  ;;  %v360_v10 = vmul.f32 %v1719_v45, %v1742_v62 }
  0xbd   : > { %v634_v60 = vpop.permute.xlu1 %633 }
  0xbe   : > { %v665_v7 = vadd.f32 %v634_v60, %v585_v14  ;;  %v666_v33 = vadd.f32 %v634_v60, %v586_v57  ;;  %v667_v1 = vadd.f32 %v634_v60, %v587_v23  ;;  %v668_v8 = vadd.f32 %v634_v60, %v588_v15 }
  0xbf   : > { %v689_v23 = vmax.f32 %v657_v34, 0.0  ;;  %v690_v15 = vmax.f32 %v658_v5, 0.0  ;;  %v355_v60 = vmul.f32 %v1717_v44, %v1725_v50  ;;  %v349_v34 = vmul.f32 %v1713_v42, %v1744_v63  ;;  %v730_v5 = vld [vmem:[%s2087_s4 + $0x8] sm:$0xff] }
  0xc0   : > { %v697_v46 = vmax.f32 %v665_v7, 0.0  ;;  %v698_v36 = vmax.f32 %v666_v33, 0.0  ;;  %v699_v19 = vmax.f32 %v667_v1, 0.0  ;;  %v700_v6 = vmax.f32 %v668_v8, 0.0  ;;  %v491_v1 = vpop.permute.xlu2 %490  ;;  %744 = vperm.xlu0 %1442, %v730_v5  }
  0xc1   : > { %v356_v7 = vmul.f32 %v1719_v45, %v1725_v50  ;;  %v357_v33 = vmul.f32 %v1713_v42, %v1742_v62  ;;  %v433_v8 = vmul.f32 %v1705_v38, %v1818_v25  ;;  %v359_v50 = vmul.f32 %v1717_v44, %v1742_v62 }
  0xc2   : > { %v725_v28 = vpack.c.bf16 %v701_v56, %v697_v46  ;;  %v726_v54 = vpack.c.bf16 %v702_v0, %v698_v36  ;;  %v727_v55 = vpack.c.bf16 %v703_v30, %v699_v19  ;;  %v728_v4 = vpack.c.bf16 %v704_v31, %v700_v6  ;;  %v2102_v6 = vld [vmem:[#allocation9_spill] sm:$0xff] }
  0xc3   : > { %v435_v30 = vmul.f32 %v1709_v40, %v1818_v25  ;;  %v436_v31 = vmul.f32 %v1711_v41, %v1818_v25  ;;  %v1881_v19 = vmul.f32 %v1715_v43, %v1744_v63  ;;  %v1885_v42 = vmul.f32 %v1717_v44, %v1744_v63 }
  0xc4   : > { %v629_v49 = vpop.permute.xlu0 %628  ;;  %814 = vmatpush.bf16.msra.mxu0 %v725_v28  ;;  %843 = vmatpush.bf16.msra.mxu1 %v726_v54  ;;  %v1889_v62 = vmul.f32 %v1719_v45, %v1744_v63 }
  0xc5   : > { %v661_v37 = vadd.f32 %v629_v49, %v581_v51  ;;  %v662_v11 = vadd.f32 %v629_v49, %v582_v47  ;;  %v663_v13 = vadd.f32 %v629_v49, %v583_v48  ;;  %872 = vmatpush.bf16.msra.mxu2 %v727_v55  ;;  %901 = vmatpush.bf16.msra.mxu3 %v728_v4 }
  0xc6   : > { %v387_v14 = vpop.permute.xlu1 %386  ;;  %v664_v57 = vadd.f32 %v629_v49, %v584_v53  ;;  %v425_v51 = vmul.f32 %v1705_v38, %v2102_v6  ;;  %v465_v47 = vadd.f32 %v433_v8, %v357_v33  ;;  %v466_v48 = vadd.f32 %v434_v29, %v358_v32 }
  0xc7   : > { %v693_v22 = vmax.f32 %v661_v37, 0.0  ;;  %v694_v56 = vmax.f32 %v662_v11, 0.0  ;;  %v695_v0 = vmax.f32 %v663_v13, 0.0  ;;  %v467_v52 = vadd.f32 %v435_v30, %v359_v50 }
  0xc8   : > { %v696_v3 = vmax.f32 %v664_v57, 0.0  ;;  %v468_v28 = vadd.f32 %v436_v31, %v360_v10  ;;  %v429_v54 = vmul.f32 %v1705_v38, %v387_v14  ;;  %v430_v43 = vmul.f32 %v1707_v39, %v387_v14  ;;  %v733_v57 = vld [vmem:[%s2087_s4 + $0x20] sm:$0xff] }
  0xc9   : > { %v721_v16 = vpack.c.bf16 %v693_v22, %v689_v23  ;;  %v722_v26 = vpack.c.bf16 %v694_v56, %v690_v15  ;;  %v723_v27 = vpack.c.bf16 %v695_v0, %v691_v12  ;;  %v431_v55 = vmul.f32 %v1709_v40, %v387_v14  ;;  %v619_v22 = vpop.permute.xlu2 %618  ;;  %759 = vperm.xlu0 %1442, %v733_v57  }
  0xca   : > { %v724_v59 = vpack.c.bf16 %v696_v3, %v692_v24  ;;  %v432_v44 = vmul.f32 %v1711_v41, %v387_v14  ;;  %v426_v37 = vmul.f32 %v1707_v39, %v2102_v6  ;;  %v427_v11 = vmul.f32 %v1709_v40, %v2102_v6 }
  0xcb   : > { %815 = vmatpush.bf16.msra.mxu0 %v721_v16  ;;  %844 = vmatpush.bf16.msra.mxu1 %v722_v26  ;;  %v428_v38 = vmul.f32 %v1711_v41, %v2102_v6  ;;  %v457_v13 = vadd.f32 %v425_v51, %v349_v34  ;;  %v537_v14 = vmul.f32 %v1767_v17, %v1835_v2 }
  0xcc   : > { %873 = vmatpush.bf16.msra.mxu2 %v723_v27  ;;  %902 = vmatpush.bf16.msra.mxu3 %v724_v59  ;;  %v538_v23 = vmul.f32 %v1769_v18, %v1835_v2  ;;  %v539_v39 = vmul.f32 %v1771_v20, %v1835_v2  ;;  %v540_v40 = vmul.f32 %v1773_v21, %v1835_v2  ;;  %v604_v51 = vpop.permute.xlu0 %603 }
  0xcd   : > { %v461_v15 = vadd.f32 %v429_v54, %v353_v58  ;;  %v462_v12 = vadd.f32 %v430_v43, %v354_v61  ;;  %v463_v41 = vadd.f32 %v431_v55, %v355_v60  ;;  %v464_v24 = vadd.f32 %v432_v44, %v356_v7  ;;  %v736_v54 = vld [vmem:[%s2087_s4 + $0x38] sm:$0xff] }
  0xce   : > { %v533_v26 = vmul.f32 %v1767_v17, %v491_v1  ;;  %v534_v27 = vmul.f32 %v1769_v18, %v491_v1  ;;  %v535_v59 = vmul.f32 %v1771_v20, %v491_v1  ;;  %v458_v43 = vadd.f32 %v426_v37, %v1881_v19 }
  0xcf   : > { %v499_v9 = vpop.permute.xlu1 %498  ;;  %v569_v7 = vadd.f32 %v537_v14, %v461_v15  ;;  %v570_v33 = vadd.f32 %v538_v23, %v462_v12  ;;  %v571_v8 = vadd.f32 %v539_v39, %v463_v41  ;;  %v572_v29 = vadd.f32 %v540_v40, %v464_v24 }
  0xd0   : > { %v541_v35 = vmul.f32 %v1767_v17, %v499_v9  ;;  %v542_v25 = vmul.f32 %v1769_v18, %v499_v9  ;;  %v543_v46 = vmul.f32 %v1771_v20, %v499_v9  ;;  %v544_v36 = vmul.f32 %v1773_v21, %v499_v9 }
  0xd1   : > { %v536_v9 = vmul.f32 %v1773_v21, %v491_v1  ;;  %v459_v55 = vadd.f32 %v427_v11, %v1885_v42  ;;  %v460_v44 = vadd.f32 %v428_v38, %v1889_v62  ;;  %774 = vperm.xlu0 %1442, %v736_v54   ;;  %v566_v40 = vadd.f32 %v534_v27, %v458_v43  ;;  %v960_v42 = vld [vmem:[%s2088_s5 + $0x10] sm:$0xff] }
  0xd2   : > { %v573_v49 = vadd.f32 %v541_v35, %v465_v47  ;;  %v574_v53 = vadd.f32 %v542_v25, %v466_v48  ;;  %v575_v45 = vadd.f32 %v543_v46, %v467_v52  ;;  %v576_v63 = vadd.f32 %v544_v36, %v468_v28  ;;  %1109 = vperm.xlu1 %1443, %v960_v42  }
  0xd3   : > { %v567_v15 = vadd.f32 %v535_v59, %v459_v55  ;;  %v568_v12 = vadd.f32 %v536_v9, %v460_v44 }
  0xd4   : > { %v653_v56 = vadd.f32 %v619_v22, %v573_v49  ;;  %v654_v0 = vadd.f32 %v619_v22, %v574_v53  ;;  %v655_v3 = vadd.f32 %v619_v22, %v575_v45  ;;  %v656_v16 = vadd.f32 %v619_v22, %v576_v63 }
  0xd6   : > { %v685_v31 = vmax.f32 %v653_v56, 0.0  ;;  %v686_v32 = vmax.f32 %v654_v0, 0.0  ;;  %v687_v50 = vmax.f32 %v655_v3, 0.0  ;;  %v688_v10 = vmax.f32 %v656_v16, 0.0 }
  0xd7   : > { %v487_v4 = vpop.permute.xlu1 %486 }
  0xd8   : > { %v529_v2 = vmul.f32 %v1767_v17, %v487_v4  ;;  %v530_v58 = vmul.f32 %v1769_v18, %v487_v4  ;;  %v531_v61 = vmul.f32 %v1771_v20, %v487_v4  ;;  %v532_v60 = vmul.f32 %v1773_v21, %v487_v4  ;;  %v2103_v17 = vld [vmem:[#allocation5_spill] sm:$0xff]  ;;  %v2104_v18 = vld [vmem:[#allocation6_spill] sm:$0xff]  ;;  %v2105_v20 = vld [vmem:[#allocation7_spill] sm:$0xff] }
  0xd9   : > { %v2106_v21 = vld [vmem:[#allocation8_spill] sm:$0xff]  ;;  %v565_v4 = vadd.f32 %v533_v26, %v457_v13  ;;  %979 = vperm.xlu0 %1442, %v960_v42  }
  0xda   : > { %v561_v25 = vadd.f32 %v529_v2, %v2103_v17  ;;  %v562_v46 = vadd.f32 %v530_v58, %v2104_v18  ;;  %v563_v36 = vadd.f32 %v531_v61, %v2105_v20  ;;  %v564_v6 = vadd.f32 %v532_v60, %v2106_v21  ;;  %v1373_v2 = vld [vmem:[%s2086_s3] sm:$0xff]  ;;  %v965_v61 = vld [vmem:[%s2088_s5 + $0x38] sm:$0xff]  ;;  %v964_v60 = vld [vmem:[%s2088_s5 + $0x30] sm:$0xff] }
  0xdb   : > { %v962_v58 = vld [vmem:[%s2088_s5 + $0x20] sm:$0xff] }
  0xdc   : > { %v641_v57 = vadd.f32 %v604_v51, %v561_v25  ;;  %v642_v14 = vadd.f32 %v604_v51, %v562_v46  ;;  %v643_v23 = vadd.f32 %v604_v51, %v563_v36  ;;  %v644_v39 = vadd.f32 %v604_v51, %v564_v6  ;;  %1117 = vperm.xlu1 %1443, %v962_v58  }
  0xde   : > { %v673_v13 = vmax.f32 %v641_v57, 0.0  ;;  %v674_v41 = vmax.f32 %v642_v14, 0.0  ;;  %v675_v24 = vmax.f32 %v643_v23, 0.0  ;;  %v676_v22 = vmax.f32 %v644_v39, 0.0 }
  0xe0   : > { %v614_v30 = vpop.permute.xlu1 %613 }
  0xe1   : > { %v649_v34 = vadd.f32 %v614_v30, %v569_v7  ;;  %v650_v5 = vadd.f32 %v614_v30, %v570_v33  ;;  %v651_v1 = vadd.f32 %v614_v30, %v571_v8  ;;  %v652_v35 = vadd.f32 %v614_v30, %v572_v29  ;;  %989 = vperm.xlu0 %1442, %v962_v58   ;;  %v1374_v7 = vld [vmem:[%s2086_s3 + $0x8] sm:$0xff]  ;;  %v966_v29 = vld [vmem:[%s2089_s6] sm:$0x3] }
  0xe2   : > { %v963_v33 = vld [vmem:[%s2088_s5 + $0x28] sm:$0xff]  ;;  %v2107_v8 = vmov 1   ;;  %v2108_v30 = vmov 0  }
  0xe3   : > { %v681_v47 = vmax.f32 %v649_v34, 0.0  ;;  %v682_v48 = vmax.f32 %v650_v5, 0.0  ;;  %v683_v52 = vmax.f32 %v651_v1, 0.0  ;;  %v684_v28 = vmax.f32 %v652_v35, 0.0  ;;  %1121 = vperm.xlu2 %1440, %v963_v33   ;;  %v1983_v5 = vpop.permute.xlu0 %1105 }
  0xe4   : > { %1125 = vperm.xlu1 %1443, %v964_v60  }
  0xe5   : > { %v717_v49 = vpack.c.bf16 %v685_v31, %v681_v47  ;;  %v718_v53 = vpack.c.bf16 %v686_v32, %v682_v48  ;;  %v719_v45 = vpack.c.bf16 %v687_v50, %v683_v52  ;;  %v720_v63 = vpack.c.bf16 %v688_v10, %v684_v28  ;;  %v1375_v31 = vld [vmem:[%s2086_s3 + $0x10] sm:$0xff]  ;;  %v1376_v32 = vld [vmem:[%s2086_s3 + $0x18] sm:$0xff]  ;;  %v740_v50 = vpop.permute.xlu2 %739 }
  0xe7   : > { %816 = vmatpush.bf16.msra.mxu0 %v717_v49  ;;  %845 = vmatpush.bf16.msra.mxu1 %v718_v53 }
  0xe8   : > { %874 = vmatpush.bf16.msra.mxu2 %v719_v45  ;;  %903 = vmatpush.bf16.msra.mxu3 %v720_v63  ;;  %v609_v19 = vpop.permute.xlu1 %608 }
  0xe9   : > { %v645_v62 = vadd.f32 %v609_v19, %v565_v4  ;;  %v646_v37 = vadd.f32 %v609_v19, %v566_v40  ;;  %v647_v11 = vadd.f32 %v609_v19, %v567_v15  ;;  %v648_v38 = vadd.f32 %v609_v19, %v568_v12  ;;  %1004 = vperm.xlu0 %1442, %v965_v61  }
  0xeb   : > { %v677_v56 = vmax.f32 %v645_v62, 0.0  ;;  %v678_v0 = vmax.f32 %v646_v37, 0.0  ;;  %v679_v3 = vmax.f32 %v647_v11, 0.0  ;;  %v680_v16 = vmax.f32 %v648_v38, 0.0  ;;  %1444 = vset.pattern.permute.xlu2 %v2108_v30 }
  0xec   : > { %1129 = vperm.xlu1 %1443, %v965_v61   ;;  %994 = vperm.xlu2 %1444, %v963_v33  }
  0xed   : > { %v713_v26 = vpack.c.bf16 %v677_v56, %v673_v13  ;;  %v714_v27 = vpack.c.bf16 %v678_v0, %v674_v41  ;;  %v715_v59 = vpack.c.bf16 %v679_v3, %v675_v24  ;;  %v716_v9 = vpack.c.bf16 %v680_v16, %v676_v22  ;;  %v1981_v10 = vpop.permute.xlu2 %754 }
  0xef   : > { %817 = vmatpush.bf16.msra.mxu0 %v713_v26  ;;  %846 = vmatpush.bf16.msra.mxu1 %v714_v27 }
  0xf0   : > { %875 = vmatpush.bf16.msra.mxu2 %v715_v59  ;;  %904 = vmatpush.bf16.msra.mxu3 %v716_v9  ;;  %v750_v34 = vpop.permute.xlu1 %749 }
  0xf1   : > { %1446 = vset.pattern.permute.xlu0 %v2107_v8 }
  0xf2   : > { %1351 = vmatmul.msk.bf16.vlgmr.msra.gmra.mxu0 %vm797_vm0, %v1373_v2  ;;  %1355 = vmatmul.msk.bf16.vlgmr.msra.gmra.mxu1 %vm797_vm0, %v1373_v2 }
  0xf3   : > { %1359 = vmatmul.msk.bf16.vlgmr.msra.gmra.mxu2 %vm797_vm0, %v1373_v2  ;;  %1363 = vmatmul.msk.bf16.vlgmr.msra.gmra.mxu3 %vm797_vm0, %v1373_v2 }
  0xf4   : > { %1445 = vset.pattern.permute.xlu1 %v2108_v30  ;;  %999 = vperm.xlu2 %1444, %v964_v60  }
  0xf5   : > { %1093 = vperm.xlu1 %1445, %v966_v29   ;;  %v1985_v1 = vpop.permute.xlu2 %769 }
  0xf8   : > { %v1987_v35 = vpop.permute.xlu1 %764 }
  0xfd   : > { %v1989_v46 = vpop.permute.xlu2 %974 }
 0x100   : > { %v970_v51 = vpop.permute.xlu1 %969 }
 0x102   : > { %1352 = vmatmul.msk.bf16.gmra.mxu0 %vm797_vm0, %v1374_v7  ;;  %1356 = vmatmul.msk.bf16.gmra.mxu1 %vm797_vm0, %v1374_v7 }
 0x103   : > { %1360 = vmatmul.msk.bf16.gmra.mxu2 %vm797_vm0, %v1374_v7  ;;  %1364 = vmatmul.msk.bf16.gmra.mxu3 %vm797_vm0, %v1374_v7 }
 0x105   : > { %v1102_v48 = vpop.permute.xlu2 %1101 }
 0x108   : > { %v1993_v53 = vpop.permute.xlu1 %984 }
 0x10d   : > { %v1997_v40 = vpop.permute.xlu2 %1113 }
 0x112   : > { %1353 = vmatmul.msk.bf16.gmra.mxu0 %vm797_vm0, %v1375_v31  ;;  %1357 = vmatmul.msk.bf16.gmra.mxu1 %vm797_vm0, %v1375_v31 }
 0x113   : > { %1361 = vmatmul.msk.bf16.gmra.mxu2 %vm797_vm0, %v1375_v31  ;;  %1365 = vmatmul.msk.bf16.gmra.mxu3 %vm797_vm0, %v1375_v31 }
 0x122   : > { %1354 = vmatmul.msk.bf16.gmra.mxu0 %vm797_vm0, %v1376_v32  ;;  %1358 = vmatmul.msk.bf16.gmra.mxu1 %vm797_vm0, %v1376_v32 }
 0x123   : > { %1362 = vmatmul.msk.bf16.gmra.mxu2 %vm797_vm0, %v1376_v32  ;;  %1366 = vmatmul.msk.bf16.gmra.mxu3 %vm797_vm0, %v1376_v32 }
 0x132   : > { %v745_v17 = vpop.permute.xlu0 %744 }
 0x13b   : > { %v1991_v47 = vpop.permute.xlu0 %759 }
 0x143   : > { %v1995_v45 = vpop.permute.xlu0 %774 }
 0x144   : > { %v1110_v60 = vpop.permute.xlu1 %1109 }
 0x14b   : > { %v980_v32 = vpop.permute.xlu0 %979 }
 0x16f   : > { %v819_v25 = vpop.f32.mrf.mxu0  ;;  %v848_v18 = vpop.f32.mrf.mxu1 }
 0x170   : > { %v820_v55 = vadd.f32 %v819_v25, %v740_v50  ;;  %v849_v44 = vadd.f32 %v848_v18, %v740_v50 }
 0x172   : > { %v926_v63 = vmax.f32 %v820_v55, 0.0  ;;  %v927_v14 = vmax.f32 %v849_v44, 0.0 }
 0x174   : > { %v1007_v41 = vmul.f32 %v970_v51, %v926_v63  ;;  %v1008_v22 = vmul.f32 %v970_v51, %v927_v14  ;;  %v1132_v56 = vmul.f32 %v1102_v48, %v926_v63  ;;  %v1133_v16 = vmul.f32 %v1102_v48, %v927_v14 }
 0x176   : > { %v877_v20 = vpop.f32.mrf.mxu2  ;;  %v906_v36 = vpop.f32.mrf.mxu3 }
 0x177   : > { %v821_v21 = vpop.f32.mrf.mxu0  ;;  %v850_v6 = vpop.f32.mrf.mxu1  ;;  %v878_v4 = vadd.f32 %v877_v20, %v740_v50  ;;  %v907_v23 = vadd.f32 %v906_v36, %v740_v50 }
 0x178   : > { %v822_v49 = vadd.f32 %v821_v21, %v745_v17  ;;  %v851_v57 = vadd.f32 %v850_v6, %v745_v17 }
 0x179   : > { %v928_v15 = vmax.f32 %v878_v4, 0.0  ;;  %v929_v0 = vmax.f32 %v907_v23, 0.0 }
 0x17a   : > { %v930_v12 = vmax.f32 %v822_v49, 0.0  ;;  %v931_v24 = vmax.f32 %v851_v57, 0.0  ;;  %v2009_v49 = vpop.permute.xlu2 %1121 }
 0x17b   : > { %v1009_v26 = vmul.f32 %v970_v51, %v928_v15  ;;  %v1134_v9 = vmul.f32 %v1102_v48, %v928_v15  ;;  %v1010_v30 = vmul.f32 %v970_v51, %v929_v0  ;;  %v1135_v31 = vmul.f32 %v1102_v48, %v929_v0 }
 0x17c   : > { %v1011_v27 = vmul.f32 %v1989_v46, %v930_v12  ;;  %v1136_v59 = vmul.f32 %v1983_v5, %v930_v12  ;;  %v1012_v7 = vmul.f32 %v1989_v46, %v931_v24  ;;  %v1137_v33 = vmul.f32 %v1983_v5, %v931_v24 }
 0x17e   : > { %v879_v52 = vpop.f32.mrf.mxu2  ;;  %v908_v28 = vpop.f32.mrf.mxu3  ;;  %v1039_v25 = vadd.f32 %v1011_v27, %v1007_v41  ;;  %v1164_v18 = vadd.f32 %v1136_v59, %v1132_v56  ;;  %v1177_v55 = vadd.f32 %v1137_v33, %v1133_v16 }
 0x17f   : > { %v824_v54 = vpop.f32.mrf.mxu0  ;;  %v853_v43 = vpop.f32.mrf.mxu1  ;;  %v880_v39 = vadd.f32 %v879_v52, %v745_v17  ;;  %v909_v62 = vadd.f32 %v908_v28, %v745_v17 }
 0x180   : > { %v825_v37 = vadd.f32 %v824_v54, %v750_v34  ;;  %v854_v11 = vadd.f32 %v853_v43, %v750_v34  ;;  %v1052_v43 = vadd.f32 %v1012_v7, %v1008_v22  ;;  %v1118_v56 = vpop.permute.xlu1 %1117 }
 0x181   : > { %v932_v3 = vmax.f32 %v880_v39, 0.0  ;;  %v933_v2 = vmax.f32 %v909_v62, 0.0 }
 0x182   : > { %v934_v58 = vmax.f32 %v825_v37, 0.0  ;;  %v935_v61 = vmax.f32 %v854_v11, 0.0 }
 0x183   : > { %v1013_v50 = vmul.f32 %v1989_v46, %v932_v3  ;;  %v1138_v17 = vmul.f32 %v1983_v5, %v932_v3  ;;  %v1014_v52 = vmul.f32 %v1989_v46, %v933_v2  ;;  %v1139_v28 = vmul.f32 %v1983_v5, %v933_v2 }
 0x184   : > { %v1016_v51 = vmul.f32 %v980_v32, %v935_v61  ;;  %v1140_v14 = vmul.f32 %v1110_v60, %v934_v58  ;;  %v1141_v23 = vmul.f32 %v1110_v60, %v935_v61 }
 0x185   : > { %v1065_v63 = vadd.f32 %v1013_v50, %v1009_v26  ;;  %v1190_v57 = vadd.f32 %v1138_v17, %v1134_v9  ;;  %v1078_v12 = vadd.f32 %v1014_v52, %v1010_v30 }
 0x186   : > { %v882_v19 = vpop.f32.mrf.mxu2  ;;  %v911_v42 = vpop.f32.mrf.mxu3  ;;  %v1053_v62 = vadd.f32 %v1052_v43, %v1016_v51  ;;  %v1165_v41 = vadd.f32 %v1164_v18, %v1140_v14  ;;  %v1178_v24 = vadd.f32 %v1177_v55, %v1141_v23 }
 0x187   : > { %v826_v38 = vpop.f32.mrf.mxu0  ;;  %v855_v13 = vpop.f32.mrf.mxu1  ;;  %v883_v8 = vadd.f32 %v882_v19, %v750_v34  ;;  %v912_v29 = vadd.f32 %v911_v42, %v750_v34  ;;  %v1015_v34 = vmul.f32 %v980_v32, %v934_v58  ;;  %v1203_v19 = vadd.f32 %v1139_v28, %v1135_v31 }
 0x188   : > { %v827_v20 = vadd.f32 %v826_v38, %v1981_v10  ;;  %v856_v36 = vadd.f32 %v855_v13, %v1981_v10 }
 0x189   : > { %v936_v44 = vmax.f32 %v883_v8, 0.0  ;;  %v937_v4 = vmax.f32 %v912_v29, 0.0  ;;  %v1040_v42 = vadd.f32 %v1039_v25, %v1015_v34 }
 0x18a   : > { %v938_v39 = vmax.f32 %v827_v20, 0.0  ;;  %v939_v15 = vmax.f32 %v856_v36, 0.0  ;;  %v2027_v36 = vpop.permute.xlu2 %994 }
 0x18b   : > { %v1017_v37 = vmul.f32 %v980_v32, %v936_v44  ;;  %v1142_v11 = vmul.f32 %v1110_v60, %v936_v44  ;;  %v1018_v38 = vmul.f32 %v980_v32, %v937_v4  ;;  %v1143_v22 = vmul.f32 %v1110_v60, %v937_v4 }
 0x18c   : > { %v1019_v3 = vmul.f32 %v1993_v53, %v938_v39  ;;  %v1020_v16 = vmul.f32 %v1993_v53, %v939_v15  ;;  %v1144_v9 = vmul.f32 %v1997_v40, %v938_v39  ;;  %v1145_v2 = vmul.f32 %v1997_v40, %v939_v15 }
 0x18d   : > { %v1066_v33 = vadd.f32 %v1065_v63, %v1017_v37  ;;  %v1191_v8 = vadd.f32 %v1190_v57, %v1142_v11  ;;  %v1079_v29 = vadd.f32 %v1078_v12, %v1018_v38  ;;  %v1204_v31 = vadd.f32 %v1203_v19, %v1143_v22 }
 0x18e   : > { %v884_v21 = vpop.f32.mrf.mxu2  ;;  %v913_v6 = vpop.f32.mrf.mxu3  ;;  %v1054_v52 = vadd.f32 %v1053_v62, %v1020_v16  ;;  %v1179_v43 = vadd.f32 %v1178_v24, %v1145_v2 }
 0x18f   : > { %v829_v48 = vpop.f32.mrf.mxu0  ;;  %v858_v54 = vpop.f32.mrf.mxu1  ;;  %v885_v46 = vadd.f32 %v884_v21, %v1981_v10  ;;  %v914_v5 = vadd.f32 %v913_v6, %v1981_v10  ;;  %v1041_v6 = vadd.f32 %v1040_v42, %v1019_v3 }
 0x190   : > { %v830_v13 = vadd.f32 %v829_v48, %v1991_v47  ;;  %v859_v0 = vadd.f32 %v858_v54, %v1991_v47  ;;  %v990_v21 = vpop.permute.xlu0 %989  ;;  %v1166_v54 = vadd.f32 %v1165_v41, %v1144_v9  ;;  %v1126_v41 = vpop.permute.xlu1 %1125 }
 0x191   : > { %v940_v10 = vmax.f32 %v885_v46, 0.0  ;;  %v941_v26 = vmax.f32 %v914_v5, 0.0 }
 0x192   : > { %v942_v30 = vmax.f32 %v830_v13, 0.0  ;;  %v943_v32 = vmax.f32 %v859_v0, 0.0 }
 0x193   : > { %v1021_v25 = vmul.f32 %v1993_v53, %v940_v10  ;;  %v1146_v18 = vmul.f32 %v1997_v40, %v940_v10  ;;  %v1022_v20 = vmul.f32 %v1993_v53, %v941_v26 }
 0x194   : > { %v1023_v51 = vmul.f32 %v990_v21, %v942_v30  ;;  %v1148_v48 = vmul.f32 %v1118_v56, %v942_v30  ;;  %v1024_v55 = vmul.f32 %v990_v21, %v943_v32  ;;  %v1149_v44 = vmul.f32 %v1118_v56, %v943_v32 }
 0x195   : > { %v1067_v57 = vadd.f32 %v1066_v33, %v1021_v25  ;;  %v1192_v14 = vadd.f32 %v1191_v8, %v1146_v18  ;;  %v1080_v53 = vadd.f32 %v1079_v29, %v1022_v20 }
 0x196   : > { %v887_v27 = vpop.f32.mrf.mxu2  ;;  %v916_v59 = vpop.f32.mrf.mxu3  ;;  %v1042_v13 = vadd.f32 %v1041_v6, %v1023_v51 }
 0x197   : > { %v888_v58 = vadd.f32 %v887_v27, %v1991_v47  ;;  %v917_v61 = vadd.f32 %v916_v59, %v1991_v47  ;;  %v831_v60 = vpop.f32.mrf.mxu0  ;;  %v860_v7 = vpop.f32.mrf.mxu1  ;;  %v1147_v47 = vmul.f32 %v1997_v40, %v941_v26  ;;  %v1055_v27 = vadd.f32 %v1054_v52, %v1024_v55 }
 0x198   : > { %v832_v50 = vadd.f32 %v831_v60, %v1987_v35  ;;  %v861_v17 = vadd.f32 %v860_v7, %v1987_v35  ;;  %v1000_v60 = vpop.permute.xlu2 %999 }
 0x199   : > { %v944_v28 = vmax.f32 %v888_v58, 0.0  ;;  %v945_v34 = vmax.f32 %v917_v61, 0.0  ;;  %v1205_v23 = vadd.f32 %v1204_v31, %v1147_v47 }
 0x19a   : > { %v946_v4 = vmax.f32 %v832_v50, 0.0  ;;  %v947_v63 = vmax.f32 %v861_v17, 0.0 }
 0x19b   : > { %v1025_v15 = vmul.f32 %v990_v21, %v944_v28  ;;  %v1150_v46 = vmul.f32 %v1118_v56, %v944_v28  ;;  %v1026_v5 = vmul.f32 %v990_v21, %v945_v34  ;;  %v1151_v62 = vmul.f32 %v1118_v56, %v945_v34 }
 0x19c   : > { %v1152_v24 = vmul.f32 %v2009_v49, %v946_v4  ;;  %v1153_v22 = vmul.f32 %v2009_v49, %v947_v63  ;;  %v1027_v3 = vmul.f32 %v2027_v36, %v946_v4  ;;  %v1028_v16 = vmul.f32 %v2027_v36, %v947_v63 }
 0x19d   : > { %v1167_v56 = vadd.f32 %v1166_v54, %v1148_v48  ;;  %v1068_v59 = vadd.f32 %v1067_v57, %v1025_v15  ;;  %v1193_v9 = vadd.f32 %v1192_v14, %v1150_v46  ;;  %v1081_v2 = vadd.f32 %v1080_v53, %v1026_v5  ;;  %v1005_v53 = vpop.permute.xlu0 %1004 }
 0x19e   : > { %v889_v40 = vpop.f32.mrf.mxu2  ;;  %v918_v39 = vpop.f32.mrf.mxu3  ;;  %v1206_v58 = vadd.f32 %v1205_v23, %v1151_v62  ;;  %v1043_v32 = vadd.f32 %v1042_v13, %v1027_v3  ;;  %v1056_v50 = vadd.f32 %v1055_v27, %v1028_v16 }
 0x19f   : > { %v890_v12 = vadd.f32 %v889_v40, %v1987_v35  ;;  %v834_v19 = vpop.f32.mrf.mxu0  ;;  %v863_v42 = vpop.f32.mrf.mxu1  ;;  %v919_v37 = vadd.f32 %v918_v39, %v1987_v35  ;;  %v1180_v35 = vadd.f32 %v1179_v43, %v1149_v44  ;;  %v1168_v7 = vadd.f32 %v1167_v56, %v1152_v24 }
 0x1a0   : > { %v835_v11 = vadd.f32 %v834_v19, %v1985_v1  ;;  %v864_v38 = vadd.f32 %v863_v42, %v1985_v1 }
 0x1a1   : > { %v948_v0 = vmax.f32 %v890_v12, 0.0  ;;  %v949_v61 = vmax.f32 %v919_v37, 0.0  ;;  %v1181_v33 = vadd.f32 %v1180_v35, %v1153_v22 }
 0x1a2   : > { %v950_v10 = vmax.f32 %v835_v11, 0.0  ;;  %v951_v26 = vmax.f32 %v864_v38, 0.0 }
 0x1a3   : > { %v1029_v8 = vmul.f32 %v2027_v36, %v948_v0  ;;  %v1154_v29 = vmul.f32 %v2009_v49, %v948_v0  ;;  %v1030_v28 = vmul.f32 %v2027_v36, %v949_v61  ;;  %v1155_v34 = vmul.f32 %v2009_v49, %v949_v61 }
 0x1a4   : > { %v1156_v30 = vmul.f32 %v1126_v41, %v950_v10  ;;  %v1157_v31 = vmul.f32 %v1126_v41, %v951_v26  ;;  %v1031_v18 = vmul.f32 %v1000_v60, %v950_v10  ;;  %v1032_v20 = vmul.f32 %v1000_v60, %v951_v26 }
 0x1a5   : > { %v1069_v54 = vadd.f32 %v1068_v59, %v1029_v8  ;;  %v1194_v43 = vadd.f32 %v1193_v9, %v1154_v29  ;;  %v1082_v12 = vadd.f32 %v1081_v2, %v1030_v28  ;;  %v1207_v19 = vadd.f32 %v1206_v58, %v1155_v34 }
 0x1a6   : > { %v892_v17 = vpop.f32.mrf.mxu2  ;;  %v921_v25 = vpop.f32.mrf.mxu3  ;;  %v1169_v4 = vadd.f32 %v1168_v7, %v1156_v30  ;;  %v1182_v63 = vadd.f32 %v1181_v33, %v1157_v31  ;;  %v1044_v23 = vadd.f32 %v1043_v32, %v1031_v18  ;;  %v1057_v40 = vadd.f32 %v1056_v50, %v1032_v20 }
 0x1a7   : > { %v893_v47 = vadd.f32 %v892_v17, %v1985_v1  ;;  %v922_v21 = vadd.f32 %v921_v25, %v1985_v1  ;;  %v836_v6 = vpop.f32.mrf.mxu0  ;;  %v865_v52 = vpop.f32.mrf.mxu1 }
 0x1a8   : > { %v837_v51 = vadd.f32 %v836_v6, %v1995_v45  ;;  %v866_v48 = vadd.f32 %v865_v52, %v1995_v45  ;;  %v1130_v1 = vpop.permute.xlu1 %1129 }
 0x1a9   : > { %v952_v55 = vmax.f32 %v893_v47, 0.0  ;;  %v953_v44 = vmax.f32 %v922_v21, 0.0 }
 0x1aa   : > { %v954_v57 = vmax.f32 %v837_v51, 0.0  ;;  %v955_v14 = vmax.f32 %v866_v48, 0.0 }
 0x1ab   : > { %v1033_v39 = vmul.f32 %v1000_v60, %v952_v55  ;;  %v1158_v36 = vmul.f32 %v1126_v41, %v952_v55  ;;  %v1034_v42 = vmul.f32 %v1000_v60, %v953_v44  ;;  %v1159_v62 = vmul.f32 %v1126_v41, %v953_v44 }
 0x1ac   : > { %v1035_v15 = vmul.f32 %v1005_v53, %v954_v57  ;;  %v1160_v49 = vmul.f32 %v1130_v1, %v954_v57  ;;  %v1036_v46 = vmul.f32 %v1005_v53, %v955_v14  ;;  %v1161_v5 = vmul.f32 %v1130_v1, %v955_v14 }
 0x1ad   : > { %v1070_v0 = vadd.f32 %v1069_v54, %v1033_v39  ;;  %v1195_v3 = vadd.f32 %v1194_v43, %v1158_v36  ;;  %v1083_v59 = vadd.f32 %v1082_v12, %v1034_v42  ;;  %v1208_v9 = vadd.f32 %v1207_v19, %v1159_v62 }
 0x1ae   : > { %v1045_v37 = vadd.f32 %v1044_v23, %v1035_v15  ;;  %v1170_v11 = vadd.f32 %v1169_v4, %v1160_v49  ;;  %v1058_v38 = vadd.f32 %v1057_v40, %v1036_v46  ;;  %v1183_v13 = vadd.f32 %v1182_v63, %v1161_v5  ;;  %v894_v24 = vpop.f32.mrf.mxu2  ;;  %v923_v22 = vpop.f32.mrf.mxu3 }
 0x1af   : > { %v895_v16 = vadd.f32 %v894_v24, %v1995_v45  ;;  %v924_v10 = vadd.f32 %v923_v22, %v1995_v45 }
 0x1b0   : > { %v1046_v26 = vrot.slane %v1045_v37, 4  ;;  %v1171_v56 = vrot.slane %v1170_v11, 4  ;;  %v1059_v27 = vrot.slane %v1058_v38, 4  ;;  %v1184_v35 = vrot.slane %v1183_v13, 4  ;;  %v1094_v14 = vpop.permute.xlu1 %1093 }
 0x1b1   : > { %v956_v2 = vmax.f32 %v895_v16, 0.0  ;;  %v957_v41 = vmax.f32 %v924_v10, 0.0 }
 0x1b2   : > { %v1047_v58 = vadd.f32 %v1046_v26, %v1045_v37  ;;  %v1172_v61 = vadd.f32 %v1171_v56, %v1170_v11  ;;  %v1060_v60 = vadd.f32 %v1059_v27, %v1058_v38  ;;  %v1185_v7 = vadd.f32 %v1184_v35, %v1183_v13 }
 0x1b3   : > { %v1037_v33 = vmul.f32 %v1005_v53, %v956_v2  ;;  %v1162_v8 = vmul.f32 %v1130_v1, %v956_v2  ;;  %v1038_v29 = vmul.f32 %v1005_v53, %v957_v41  ;;  %v1163_v30 = vmul.f32 %v1130_v1, %v957_v41 }
 0x1b4   : > { %v1048_v31 = vrot.slane %v1047_v58, 2  ;;  %v1173_v32 = vrot.slane %v1172_v61, 2  ;;  %v1061_v50 = vrot.slane %v1060_v60, 2  ;;  %v1186_v45 = vrot.slane %v1185_v7, 2 }
 0x1b5   : > { %v1071_v17 = vadd.f32 %v1070_v0, %v1037_v33  ;;  %v1196_v25 = vadd.f32 %v1195_v3, %v1162_v8  ;;  %v1084_v18 = vadd.f32 %v1083_v59, %v1038_v29  ;;  %v1209_v20 = vadd.f32 %v1208_v9, %v1163_v30 }
 0x1b6   : > { %v1174_v47 = vadd.f32 %v1173_v32, %v1172_v61  ;;  %v1062_v21 = vadd.f32 %v1061_v50, %v1060_v60  ;;  %v1187_v6 = vadd.f32 %v1186_v45, %v1185_v7  ;;  %v1049_v48 = vadd.f32 %v1048_v31, %v1047_v58 }
 0x1b7   : > { %v1072_v52 = vrot.slane %v1071_v17, 4  ;;  %v1197_v28 = vrot.slane %v1196_v25, 4  ;;  %v1085_v34 = vrot.slane %v1084_v18, 4  ;;  %v1210_v51 = vrot.slane %v1209_v20, 4 }
 0x1b8   : > { %v1175_v54 = vrot.slane %v1174_v47, 1  ;;  %v1063_v43 = vrot.slane %v1062_v21, 1  ;;  %v1188_v55 = vrot.slane %v1187_v6, 1  ;;  %v1050_v49 = vrot.slane %v1049_v48, 1 }
 0x1b9   : > { %v1073_v44 = vadd.f32 %v1072_v52, %v1071_v17  ;;  %v1198_v4 = vadd.f32 %v1197_v28, %v1196_v25  ;;  %v1086_v63 = vadd.f32 %v1085_v34, %v1084_v18  ;;  %v1211_v57 = vadd.f32 %v1210_v51, %v1209_v20 }
 0x1ba   : > { %v1176_v53 = vadd.f32 %v1175_v54, %v1174_v47  ;;  %v1064_v1 = vadd.f32 %v1063_v43, %v1062_v21  ;;  %v1189_v23 = vadd.f32 %v1188_v55, %v1187_v6  ;;  %v1051_v22 = vadd.f32 %v1050_v49, %v1049_v48 }
 0x1bb   : > { %v1074_v40 = vrot.slane %v1073_v44, 2  ;;  %v1199_v39 = vrot.slane %v1198_v4, 2  ;;  %v1087_v36 = vrot.slane %v1086_v63, 2  ;;  %v1212_v15 = vrot.slane %v1211_v57, 2 }
 0x1bc   : > { %v1216_v46 = vadd.f32 %v1176_v53, %v1094_v14  ;;  %v1217_v5 = vadd.f32 %v1189_v23, %v1094_v14  ;;  %v1097_v37 = vadd.f32 %v1094_v14, %v1064_v1  ;;  %v1234_v56 = vlaneseq }
 0x1bd   : > { %v1075_v12 = vadd.f32 %v1074_v40, %v1073_v44  ;;  %v1200_v19 = vadd.f32 %v1199_v39, %v1198_v4  ;;  %v1088_v42 = vadd.f32 %v1087_v36, %v1086_v63  ;;  %v1213_v62 = vadd.f32 %v1212_v15, %v1211_v57 }
 0x1be   : > { %1243 = vst [vmem:[#allocation1] sm:$0xff] %v1216_v46  ;;  %v1224_v26 = vrot.slane %v1097_v37, 7  ;;  %v1096_v2 = vadd.f32 %v1094_v14, %v1051_v22  ;;  %vm1236_vm4 = vcmp.lt.s32.totalorder %v1234_v56, 512 }
 0x1bf   : > { %v1076_v11 = vrot.slane %v1075_v12, 1  ;;  %v1201_v38 = vrot.slane %v1200_v19, 1  ;;  %v1089_v13 = vrot.slane %v1088_v42, 1  ;;  %v1214_v24 = vrot.slane %v1213_v62, 1  ;;  %1244 = vst [vmem:[#allocation1 + $0x9] sm:$0xff] %v1217_v5 }
 0x1c0   : > { %v1228_v61 = vsel %vm1227_vm1, %v1096_v2, %v1224_v26 }
 0x1c1   : > { %v1077_v0 = vadd.f32 %v1076_v11, %v1075_v12  ;;  %v1202_v3 = vadd.f32 %v1201_v38, %v1200_v19  ;;  %v1090_v16 = vadd.f32 %v1089_v13, %v1088_v42  ;;  %v1215_v10 = vadd.f32 %v1214_v24, %v1213_v62 }
 0x1c3   : > { %v1218_v27 = vadd.f32 %v1202_v3, %v1094_v14  ;;  %v1219_v35 = vadd.f32 %v1215_v10, %v1094_v14  ;;  %v1098_v59 = vadd.f32 %v1094_v14, %v1077_v0  ;;  %v1099_v9 = vadd.f32 %v1094_v14, %v1090_v16 }
 0x1c5   : > { %1245 = vst [vmem:[#allocation1 + $0x12] sm:$0xff] %v1218_v27  ;;  %v1225_v41 = vrot.slane %v1098_v59, 6  ;;  %v1226_v58 = vrot.slane %v1099_v9, 5 }
 0x1c6   : > { %1246 = vst [vmem:[#allocation1 + $0x1b] sm:$0xff] %v1219_v35 }
 0x1c7   : > { %v1230_v60 = vsel %vm1229_vm2, %v1225_v41, %v1226_v58 }
 0x1c8   : > { %v1232_v7 = vsel %vm1231_vm3, %v1228_v61, %v1230_v60 }
 0x1c9   : > { %1238 = vst.msk [vmem:[%s272_s14] ss:$2 sm:$0xf] %vm1236_vm4, %v1232_v7 }
 0x1cd   : > { %v1248_v33 = vld [vmem:[#allocation1 + $0x1] ss:$9 sm:$0xff] }
 0x1ce   : > { %1367 = vst.msk [vmem:[%s272_s14 + $0x1] ss:$2 sm:$0xf] %vm1236_vm4, %v1248_v33 }
 0x1cf   : > { %1474 = shalt.err (!%p1471_p3)
}
 0x1d0   : > { %1378 = dma.vmem_to_hbm [thread:$0]  (%p1592_p5), %s1267_s28, 128, %s1269_s15, %s1253_s16  }
 0x1d1 PF: > { %p1384_p4 = scmp.ge.s32.totalorder %s1509_s27, 2  ;;  %s1280_s22 = sand.u32 1, %s1497_s24  }
 0x1d2   : > { %s1281_s8 = scalar_lea.sflag [#allocation3], %s1280_s22 }
 0x1d3   : > { %p1381_p7 = pnand %p1384_p4, %p1596_p6 }
 0x1d5   : > { %p1382_p8 = pneg %p1381_p7 }
 0x1d7   : > { %1492 = dma.done.wait (%p1382_p8), %s1281_s8, 128  }
 0x1d8   : > { %1494 = vsyncadd (%p1382_p8), %s1281_s8, 4294967168  ;;  %p17_p9 = scmp.ge.s32.totalorder %s1579_s30, 8   ;;  %s2109_s24 = smov %s1501_s25 }
 0x1d9   : > { %s2110_s25 = smov %s1505_s26  ;;  %s2111_s26 = smov %s1590_s10 }
 0x1da   : > { %s2112_s27 = smov %s1579_s30  ;;  %19 = sbr.rel (!%p17_p9) target bundleno = 3 (0x3), region = 85 }
 0x1df   :  { %1287 = vsyncpa [#allocation3], 1 }
 0x1e0   :  { %1289 = vsyncpa [#allocation3 + $0x1], 1 }

</bundles_post_ra>
